<compile_context>
chip_gen: v6e
topology: v6e:2x2x1
jax: 0.10.0
libtpu: 0.0.40
codegen_flags: <defaults>
</compile_context>

<pallas_src>
import functools

import jax
import jax.numpy as jnp
from jax.experimental import pallas as pl
from jax.experimental.pallas import tpu as pltpu


# Phase folding table: for output phase p (0/1) and folded tap t (0/1, i.e.
# low-res offset p - 1 + t), _FOLD[p, t, d] = 1 iff original conv tap d folds
# into it, i.e. (p + d - 1) // 2 == p - 1 + t.
_FOLD = jnp.array([[[1, 0, 0],
                    [0, 1, 1]],
                   [[1, 1, 0],
                    [0, 0, 1]]], dtype=jnp.float32)


def _fold_conv_weight(conv_weight):
    """(C_out, C_in, 3, 3) OIHW weight -> (2, 2, 4, C_out, C_in) phase weights.

    Wf[a, b, 2*r + c, co, ci] multiplies the low-res input sample at offset
    (a - 1 + r, b - 1 + c) when producing output pixel (2i + a, 2j + b).
    """
    w = conv_weight.astype(jnp.float32)
    wf = jnp.einsum("ary,bcx,oiyx->abrcoi", _FOLD, _FOLD, w)
    a2, b2, r2, c2, co, ci = wf.shape
    return wf.reshape(a2, b2, r2 * c2, co, ci)


# ----------------------------------------------------------------------------
# Kernels
# ----------------------------------------------------------------------------
def _upsample_conv_kernel(x_ref, wf_ref, bias_ref, o_ref, pad_ref, *, c_in, h, w):
    # x_ref:    (1, C_in, H*W)            VMEM, lane-dense low-res input
    # wf_ref:   (2, 2, 4, co_tile, C_in)  VMEM, folded phase conv weights
    # bias_ref: (co_tile, 1)              VMEM
    # o_ref:    (1, co_tile, 2, 2, H*W)   VMEM, phase-separated output
    # pad_ref:  (C_in, H*W + 2*(W+1))     VMEM scratch, zero-haloed flat input, f32
    hw = h * w
    base = w + 1

    # Fill the haloed scratch once per batch element (the C_out-tile axis is the
    # innermost "arbitrary" grid axis, so program_id(1) == 0 always runs first).
    @pl.when(pl.program_id(1) == 0)
    def _fill():
        zeros_halo = jnp.zeros((c_in, base), jnp.float32)
        pad_ref[:, pl.ds(0, base)] = zeros_halo
        pad_ref[:, pl.ds(base + hw, base)] = zeros_halo
        pad_ref[:, pl.ds(base, hw)] = x_ref[0].astype(jnp.float32)

    # Low-res column index of every lane (masks cross-row neighbours of lane
    # shifted taps).  Hoisted out of the phase loops.
    col = jax.lax.broadcasted_iota(jnp.int32, (c_in, hw), 1) % w
    bias = bias_ref[...].astype(jnp.float32)                       # (co_tile, 1)

    for pa in (0, 1):           # output row phase: rows 2i + pa
        for pb in (0, 1):       # output col phase: cols 2j + pb
            acc = None
            for r in (0, 1):    # folded row tap -> low-res row offset pa - 1 + r
                for c in (0, 1):
                    dr = pa - 1 + r
                    dc = pb - 1 + c
                    tap = pad_ref[:, pl.ds(base + dr * w + dc, hw)]  # (C_in, H*W)
                    if dc == -1:
                        tap = jnp.where(col >= 1, tap, 0.0)
                    elif dc == 1:
                        tap = jnp.where(col <= w - 2, tap, 0.0)
                    # MXU channel contraction (previously scalar VPU MACs).
                    part = jnp.dot(wf_ref[pa, pb, 2 * r + c], tap,
                                   preferred_element_type=jnp.float32)
                    acc = part if acc is None else acc + part
            o_ref[0, :, pa, pb, :] = (acc + bias).astype(o_ref.dtype)


def _upsample_nearest_kernel(x_ref, o_ref, *, w, mm_dtype):
    # x_ref: (1, C*H, W);  o_ref: (1, C*H, 2, 2W).  Pure data movement:
    # column repeat via an exact 0/1 operator on the MXU, row repeat via two
    # stores into the free (C*H, 2, 2W) view of the output.
    x2d = x_ref[0].astype(mm_dtype)                                   # (C*H, W)
    src = jax.lax.broadcasted_iota(jnp.int32, (w, 2 * w), 0)
    dst = jax.lax.broadcasted_iota(jnp.int32, (w, 2 * w), 1)
    rep = (src == dst // 2).astype(mm_dtype)                          # (W, 2W)
    colrep = jnp.dot(x2d, rep, preferred_element_type=jnp.float32)    # (C*H, 2W)
    colrep = colrep.astype(o_ref.dtype)
    o_ref[0, :, 0, :] = colrep        # output rows 2i
    o_ref[0, :, 1, :] = colrep        # output rows 2i + 1


# ----------------------------------------------------------------------------
# Tiling heuristic (VMEM-budget aware, per review for v7x/v6e)
# ----------------------------------------------------------------------------
def _pick_co_tile(c_in, c_out, hw, w, x_itemsize, out_itemsize):
    """Largest C_out tile whose per-grid-step VMEM footprint fits a safe budget."""
    try:
        vmem_cap = pltpu.get_tpu_info().vmem_capacity_bytes
    except Exception:                                   # pragma: no cover
        vmem_cap = 128 * 1024 * 1024
    budget = min(vmem_cap // 4, 24 * 1024 * 1024)

    fixed = (2 * c_in * hw * x_itemsize                 # double-buffered input block
             + 4 * c_in * (hw + 2 * (w + 1))            # f32 halo scratch
             + 4 * c_in * hw)                           # one live f32 tap tile

    def cost(t):
        return (fixed
                + 2 * 4 * t * hw * out_itemsize         # double-buffered 4-phase output
                + 2 * 16 * t * c_in * 4                 # double-buffered folded weights
                + 2 * t * 4                             # bias
                + t * hw * 4)                           # live f32 accumulator

    # co_tile must equal C_out or be a multiple of 8 dividing C_out (8,128 rule).
    cands = sorted({c_out} | {t for t in range(8, c_out, 8) if c_out % t == 0},
                   reverse=True)
    for t in cands:
        if cost(t) <= budget:
            return t
    return cands[-1]


# ----------------------------------------------------------------------------
# Wrapper (module forward)
# ----------------------------------------------------------------------------
def upsample_forward(x, conv_weight=None, conv_bias=None, *,
                     num_channels, use_conv, out_channels=None):
    """Pallas implementation of Upsample.forward (2-D case, NCHW)."""
    if x.shape[1] != num_channels:
        raise ValueError("Input channels should be equal to num_channels")
    out_channels = out_channels or num_channels
    B, C, H, W = x.shape
    HW = H * W
    dtype = x.dtype

    if not use_conv:
        mm_dtype = jnp.bfloat16 if dtype == jnp.bfloat16 else jnp.float32
        kernel = functools.partial(_upsample_nearest_kernel, w=W, mm_dtype=mm_dtype)
        y = pl.pallas_call(
            kernel,
            out_shape=jax.ShapeDtypeStruct((B, C * H, 2, 2 * W), dtype),
            grid_spec=pltpu.PrefetchScalarGridSpec(
                num_scalar_prefetch=0,
                grid=(B,),
                in_specs=[pl.BlockSpec((1, C * H, W), lambda b: (b, 0, 0))],
                out_specs=pl.BlockSpec((1, C * H, 2, 2 * W),
                                       lambda b: (b, 0, 0, 0)),
            ),
            compiler_params=pltpu.CompilerParams(
                dimension_semantics=("parallel",)),
        )(x.reshape(B, C * H, W))
        # (B, C*H, 2, 2W) is row-major identical to (B, C, 2H, 2W): free reshape.
        return y.reshape(B, C, 2 * H, 2 * W)

    # use_conv=True: nearest-2x upsample + Conv(3x3, stride 1, pad 1) + bias,
    # decomposed into four low-resolution phase convolutions on the MXU.
    if conv_weight is None:
        raise ValueError("use_conv=True requires conv_weight")
    if conv_bias is None:
        conv_bias = jnp.zeros((out_channels,), jnp.float32)

    wf = _fold_conv_weight(conv_weight)                     # (2, 2, 4, C_out, C_in)
    bias = conv_bias.astype(jnp.float32).reshape(out_channels, 1)

    co_tile = _pick_co_tile(C, out_channels, HW, W, x.dtype.itemsize, dtype.itemsize)
    n_co = out_channels // co_tile

    kernel = functools.partial(_upsample_conv_kernel, c_in=C, h=H, w=W)
    y = pl.pallas_call(
        kernel,
        out_shape=jax.ShapeDtypeStruct((B, out_channels, 2, 2, HW), dtype),
        grid_spec=pltpu.PrefetchScalarGridSpec(
            num_scalar_prefetch=0,
            grid=(B, n_co),
            in_specs=[
                pl.BlockSpec((1, C, HW), lambda b, co: (b, 0, 0)),
                pl.BlockSpec((2, 2, 4, co_tile, C), lambda b, co: (0, 0, 0, co, 0)),
                pl.BlockSpec((co_tile, 1), lambda b, co: (co, 0)),
            ],
            out_specs=pl.BlockSpec((1, co_tile, 2, 2, HW),
                                   lambda b, co: (b, co, 0, 0, 0)),
            scratch_shapes=[pltpu.VMEM((C, HW + 2 * (W + 1)), jnp.float32)],
        ),
        compiler_params=pltpu.CompilerParams(
            dimension_semantics=("parallel", "arbitrary")),
    )(x.reshape(B, C, HW), wf, bias)

    # Interleave the 2x2 phases back to NCHW (wrapper-side layout plumbing).
    y = y.reshape(B, out_channels, 2, 2, H, W)
    return y.transpose(0, 1, 4, 2, 5, 3).reshape(B, out_channels, 2 * H, 2 * W)


# ----------------------------------------------------------------------------
# Pure-JAX reference for verification
# ----------------------------------------------------------------------------
def upsample_reference(x, conv_weight=None, conv_bias=None, *, use_conv):
    up = jnp.repeat(jnp.repeat(x.astype(jnp.float32), 2, axis=2), 2, axis=3)
    up = up.astype(x.dtype)
    if not use_conv:
        return up
    out = jax.lax.conv_general_dilated(
        up.astype(jnp.float32), conv_weight.astype(jnp.float32),
        window_strides=(1, 1), padding=((1, 1), (1, 1)),
        dimension_numbers=("NCHW", "OIHW", "NCHW"))
    out = out + conv_bias.astype(jnp.float32)[None, :, None, None]
    return out.astype(x.dtype)


if __name__ == "__main__":
    # Small shapes consistent with the module: x is (batch, channels, H, W).
    B, C, H, W = 2, 4, 16, 16
    out_channels = 8

    key = jax.random.PRNGKey(0)
    kx, kw, kb = jax.random.split(key, 3)
    x = jax.random.normal(kx, (B, C, H, W), dtype=jnp.float32)
    conv_w = jax.random.normal(kw, (out_channels, C, 3, 3), jnp.float32) * 0.1
    conv_b = jax.random.normal(kb, (out_channels,), jnp.float32) * 0.1

    # use_conv=True path (upsample + 3x3 conv, phase-decomposed MXU matmuls).
    out = upsample_forward(x, conv_w, conv_b, num_channels=C, use_conv=True,
                           out_channels=out_channels)
    out = jax.block_until_ready(out)
    ref = upsample_reference(x, conv_w, conv_b, use_conv=True)
    assert out.shape == (B, out_channels, 2 * H, 2 * W)
    assert jnp.allclose(out, ref, rtol=1e-4, atol=1e-4), "conv path mismatch vs reference"

    # use_conv=False path (pure nearest-neighbour 2x upsample).
    out2 = upsample_forward(x, num_channels=C, use_conv=False)
    out2 = jax.block_until_ready(out2)
    ref2 = upsample_reference(x, use_conv=False)
    assert out2.shape == (B, C, 2 * H, 2 * W)
    assert jnp.allclose(out2, ref2, rtol=1e-5, atol=1e-5), "upsample path mismatch vs reference"

    print("KERNEL_OK")
</pallas_src>

<mosaic_0001>
module attributes {stable_mosaic.version = 11 : i64} {
  func.func @_upsample_conv_kernel(%arg0: i32, %arg1: i32, %arg2: memref<1x4x256xf32, #tpu.memory_space<vmem>>, %arg3: memref<2x2x4x8x4xf32, #tpu.memory_space<vmem>>, %arg4: memref<8x1xf32, #tpu.memory_space<vmem>>, %arg5: memref<1x8x2x2x256xf32, #tpu.memory_space<vmem>>, %arg6: memref<4x290xf32, #tpu.memory_space<vmem>>) attributes {dimension_semantics = [#tpu.dimension_semantics<parallel>, #tpu.dimension_semantics<arbitrary>], iteration_bounds = array<i64: 2, 1>, scalar_prefetch = 0 : i64, scratch_operands = 1 : i64, tpu.core_type = #tpu.core_type<tc>, window_params = [{transform_indices = @transform_0, window_bounds = array<i64: 1, 4, 256>}, {transform_indices = @transform_1, window_bounds = array<i64: 2, 2, 4, 8, 4>}, {transform_indices = @transform_2, window_bounds = array<i64: 8, 1>}, {transform_indices = @transform_3, window_bounds = array<i64: 1, 8, 2, 2, 256>}]} {
    %c0_i32 = arith.constant 0 : i32
    %0 = arith.cmpi eq, %arg1, %c0_i32 : i32
    %1 = arith.extui %0 : i1 to i32
    %c0_i32_0 = arith.constant 0 : i32
    %2 = arith.cmpi ne, %1, %c0_i32_0 : i32
    scf.if %2 {
      %cst_159 = arith.constant 0.000000e+00 : f32
      %149 = vector.broadcast %cst_159 : f32 to vector<4x17xf32>
      %c0_160 = arith.constant 0 : index
      %c0_161 = arith.constant 0 : index
      %150 = vector.load %arg6[%c0_160, %c0_161] : memref<4x290xf32, #tpu.memory_space<vmem>>, vector<4x17xf32>
      tpu.vector_store %arg6[%c0_160, %c0_161], %149 {strides = array<i32>} : memref<4x290xf32, #tpu.memory_space<vmem>>, vector<4x17xf32>,
      %c0_162 = arith.constant 0 : index
      %c273 = arith.constant 273 : index
      %151 = vector.load %arg6[%c0_162, %c273] : memref<4x290xf32, #tpu.memory_space<vmem>>, vector<4x17xf32>
      tpu.vector_store %arg6[%c0_162, %c273], %149 {strides = array<i32>} : memref<4x290xf32, #tpu.memory_space<vmem>>, vector<4x17xf32>,
      %c0_163 = arith.constant 0 : index
      %c0_164 = arith.constant 0 : index
      %c0_165 = arith.constant 0 : index
      %152 = vector.load %arg2[%c0_163, %c0_164, %c0_165] : memref<1x4x256xf32, #tpu.memory_space<vmem>>, vector<1x4x256xf32>
      %153 = vector.shape_cast %152 : vector<1x4x256xf32> to vector<4x256xf32>
      %c0_166 = arith.constant 0 : index
      %c17_167 = arith.constant 17 : index
      %154 = vector.load %arg6[%c0_166, %c17_167] : memref<4x290xf32, #tpu.memory_space<vmem>>, vector<4x256xf32>
      tpu.vector_store %arg6[%c0_166, %c17_167], %153 {strides = array<i32>} : memref<4x290xf32, #tpu.memory_space<vmem>>, vector<4x256xf32>,
    } else {
    }
    %3 = tpu.iota {dimensions = array<i32: 1>} : vector<4x256xi32>
    %c16_i32 = arith.constant 16 : i32
    %c0_i32_1 = arith.constant 0 : i32
    %4 = arith.cmpi eq, %c16_i32, %c0_i32_1 : i32
    %c1_i32 = arith.constant 1 : i32
    %5 = arith.select %4, %c1_i32, %c16_i32 : i32
    %6 = vector.broadcast %5 : i32 to vector<4x256xi32>
    %7 = arith.remsi %3, %6 : vector<4x256xi32>
    %c0_i32_2 = arith.constant 0 : i32
    %8 = vector.broadcast %c0_i32_2 : i32 to vector<4x256xi32>
    %9 = arith.cmpi ne, %7, %8 : vector<4x256xi32>
    %c0_i32_3 = arith.constant 0 : i32
    %10 = vector.broadcast %c0_i32_3 : i32 to vector<4x256xi32>
    %11 = arith.cmpi slt, %7, %10 : vector<4x256xi32>
    %c0_i32_4 = arith.constant 0 : i32
    %12 = arith.cmpi slt, %5, %c0_i32_4 : i32
    %13 = vector.broadcast %12 : i1 to vector<4x256xi1>
    %14 = vector.broadcast %13 : vector<4x256xi1> to vector<4x256xi1>
    %15 = arith.xori %11, %14 : vector<4x256xi1>
    %16 = arith.andi %15, %9 : vector<4x256xi1>
    %17 = vector.broadcast %5 : i32 to vector<4x256xi32>
    %18 = arith.addi %7, %17 : vector<4x256xi32>
    %19 = arith.select %16, %18, %7 : vector<4x256xi1>, vector<4x256xi32>
    %c0 = arith.constant 0 : index
    %c0_5 = arith.constant 0 : index
    %20 = vector.load %arg4[%c0, %c0_5] : memref<8x1xf32, #tpu.memory_space<vmem>>, vector<8x1xf32>
    %c0_6 = arith.constant 0 : index
    %c0_7 = arith.constant 0 : index
    %21 = vector.load %arg6[%c0_6, %c0_7] : memref<4x290xf32, #tpu.memory_space<vmem>>, vector<4x256xf32>
    %c1_i32_8 = arith.constant 1 : i32
    %22 = vector.broadcast %c1_i32_8 : i32 to vector<4x256xi32>
    %23 = arith.cmpi sge, %19, %22 : vector<4x256xi32>
    %cst = arith.constant 0.000000e+00 : f32
    %24 = vector.broadcast %cst : f32 to vector<4x256xf32>
    %25 = arith.select %23, %21, %24 : vector<4x256xi1>, vector<4x256xf32>
    %c0_9 = arith.constant 0 : index
    %c0_10 = arith.constant 0 : index
    %c0_11 = arith.constant 0 : index
    %c0_12 = arith.constant 0 : index
    %c0_13 = arith.constant 0 : index
    %26 = vector.load %arg3[%c0_9, %c0_10, %c0_11, %c0_12, %c0_13] : memref<2x2x4x8x4xf32, #tpu.memory_space<vmem>>, vector<1x1x1x8x4xf32>
    %27 = vector.shape_cast %26 : vector<1x1x1x8x4xf32> to vector<8x4xf32>
    %cst_14 = arith.constant dense<0.000000e+00> : vector<8x256xf32>
    %28 = tpu.matmul %27, %25, %cst_14 {dimension_numbers = #tpu.dot_dimension_numbers<[1], [0], [0], [1], [0, 0, 1, 1], [], []>} : vector<8x4xf32>, vector<4x256xf32>, vector<8x256xf32> -> vector<8x256xf32>
    %c0_15 = arith.constant 0 : index
    %c1 = arith.constant 1 : index
    %29 = vector.load %arg6[%c0_15, %c1] : memref<4x290xf32, #tpu.memory_space<vmem>>, vector<4x256xf32>
    %c0_16 = arith.constant 0 : index
    %c0_17 = arith.constant 0 : index
    %c1_18 = arith.constant 1 : index
    %c0_19 = arith.constant 0 : index
    %c0_20 = arith.constant 0 : index
    %30 = vector.load %arg3[%c0_16, %c0_17, %c1_18, %c0_19, %c0_20] : memref<2x2x4x8x4xf32, #tpu.memory_space<vmem>>, vector<1x1x1x8x4xf32>
    %31 = vector.shape_cast %30 : vector<1x1x1x8x4xf32> to vector<8x4xf32>
    %cst_21 = arith.constant dense<0.000000e+00> : vector<8x256xf32>
    %32 = tpu.matmul %31, %29, %cst_21 {dimension_numbers = #tpu.dot_dimension_numbers<[1], [0], [0], [1], [0, 0, 1, 1], [], []>} : vector<8x4xf32>, vector<4x256xf32>, vector<8x256xf32> -> vector<8x256xf32>
    %33 = arith.addf %28, %32 : vector<8x256xf32>
    %c0_22 = arith.constant 0 : index
    %c16 = arith.constant 16 : index
    %34 = vector.load %arg6[%c0_22, %c16] : memref<4x290xf32, #tpu.memory_space<vmem>>, vector<4x256xf32>
    %c1_i32_23 = arith.constant 1 : i32
    %35 = vector.broadcast %c1_i32_23 : i32 to vector<4x256xi32>
    %36 = arith.cmpi sge, %19, %35 : vector<4x256xi32>
    %cst_24 = arith.constant 0.000000e+00 : f32
    %37 = vector.broadcast %cst_24 : f32 to vector<4x256xf32>
    %38 = arith.select %36, %34, %37 : vector<4x256xi1>, vector<4x256xf32>
    %c0_25 = arith.constant 0 : index
    %c0_26 = arith.constant 0 : index
    %c2 = arith.constant 2 : index
    %c0_27 = arith.constant 0 : index
    %c0_28 = arith.constant 0 : index
    %39 = vector.load %arg3[%c0_25, %c0_26, %c2, %c0_27, %c0_28] : memref<2x2x4x8x4xf32, #tpu.memory_space<vmem>>, vector<1x1x1x8x4xf32>
    %40 = vector.shape_cast %39 : vector<1x1x1x8x4xf32> to vector<8x4xf32>
    %cst_29 = arith.constant dense<0.000000e+00> : vector<8x256xf32>
    %41 = tpu.matmul %40, %38, %cst_29 {dimension_numbers = #tpu.dot_dimension_numbers<[1], [0], [0], [1], [0, 0, 1, 1], [], []>} : vector<8x4xf32>, vector<4x256xf32>, vector<8x256xf32> -> vector<8x256xf32>
    %42 = arith.addf %33, %41 : vector<8x256xf32>
    %c0_30 = arith.constant 0 : index
    %c17 = arith.constant 17 : index
    %43 = vector.load %arg6[%c0_30, %c17] : memref<4x290xf32, #tpu.memory_space<vmem>>, vector<4x256xf32>
    %c0_31 = arith.constant 0 : index
    %c0_32 = arith.constant 0 : index
    %c3 = arith.constant 3 : index
    %c0_33 = arith.constant 0 : index
    %c0_34 = arith.constant 0 : index
    %44 = vector.load %arg3[%c0_31, %c0_32, %c3, %c0_33, %c0_34] : memref<2x2x4x8x4xf32, #tpu.memory_space<vmem>>, vector<1x1x1x8x4xf32>
    %45 = vector.shape_cast %44 : vector<1x1x1x8x4xf32> to vector<8x4xf32>
    %cst_35 = arith.constant dense<0.000000e+00> : vector<8x256xf32>
    %46 = tpu.matmul %45, %43, %cst_35 {dimension_numbers = #tpu.dot_dimension_numbers<[1], [0], [0], [1], [0, 0, 1, 1], [], []>} : vector<8x4xf32>, vector<4x256xf32>, vector<8x256xf32> -> vector<8x256xf32>
    %47 = arith.addf %42, %46 : vector<8x256xf32>
    %48 = vector.broadcast %20 : vector<8x1xf32> to vector<8x256xf32>
    %49 = arith.addf %47, %48 : vector<8x256xf32>
    %c0_36 = arith.constant 0 : index
    %c0_37 = arith.constant 0 : index
    %c0_38 = arith.constant 0 : index
    %c0_39 = arith.constant 0 : index
    %c0_40 = arith.constant 0 : index
    %50 = vector.load %arg5[%c0_36, %c0_37, %c0_38, %c0_39, %c0_40] : memref<1x8x2x2x256xf32, #tpu.memory_space<vmem>>, vector<1x8x1x1x256xf32>
    %51 = vector.shape_cast %50 : vector<1x8x1x1x256xf32> to vector<8x256xf32>
    %52 = vector.shape_cast %49 : vector<8x256xf32> to vector<1x8x1x1x256xf32>
    tpu.vector_store %arg5[%c0_36, %c0_37, %c0_38, %c0_39, %c0_40], %52 {strides = array<i32>} : memref<1x8x2x2x256xf32, #tpu.memory_space<vmem>>, vector<1x8x1x1x256xf32>,
    %c0_41 = arith.constant 0 : index
    %c1_42 = arith.constant 1 : index
    %53 = vector.load %arg6[%c0_41, %c1_42] : memref<4x290xf32, #tpu.memory_space<vmem>>, vector<4x256xf32>
    %c0_43 = arith.constant 0 : index
    %c1_44 = arith.constant 1 : index
    %c0_45 = arith.constant 0 : index
    %c0_46 = arith.constant 0 : index
    %c0_47 = arith.constant 0 : index
    %54 = vector.load %arg3[%c0_43, %c1_44, %c0_45, %c0_46, %c0_47] : memref<2x2x4x8x4xf32, #tpu.memory_space<vmem>>, vector<1x1x1x8x4xf32>
    %55 = vector.shape_cast %54 : vector<1x1x1x8x4xf32> to vector<8x4xf32>
    %cst_48 = arith.constant dense<0.000000e+00> : vector<8x256xf32>
    %56 = tpu.matmul %55, %53, %cst_48 {dimension_numbers = #tpu.dot_dimension_numbers<[1], [0], [0], [1], [0, 0, 1, 1], [], []>} : vector<8x4xf32>, vector<4x256xf32>, vector<8x256xf32> -> vector<8x256xf32>
    %c0_49 = arith.constant 0 : index
    %c2_50 = arith.constant 2 : index
    %57 = vector.load %arg6[%c0_49, %c2_50] : memref<4x290xf32, #tpu.memory_space<vmem>>, vector<4x256xf32>
    %c14_i32 = arith.constant 14 : i32
    %58 = vector.broadcast %c14_i32 : i32 to vector<4x256xi32>
    %59 = arith.cmpi sle, %19, %58 : vector<4x256xi32>
    %cst_51 = arith.constant 0.000000e+00 : f32
    %60 = vector.broadcast %cst_51 : f32 to vector<4x256xf32>
    %61 = arith.select %59, %57, %60 : vector<4x256xi1>, vector<4x256xf32>
    %c0_52 = arith.constant 0 : index
    %c1_53 = arith.constant 1 : index
    %c1_54 = arith.constant 1 : index
    %c0_55 = arith.constant 0 : index
    %c0_56 = arith.constant 0 : index
    %62 = vector.load %arg3[%c0_52, %c1_53, %c1_54, %c0_55, %c0_56] : memref<2x2x4x8x4xf32, #tpu.memory_space<vmem>>, vector<1x1x1x8x4xf32>
    %63 = vector.shape_cast %62 : vector<1x1x1x8x4xf32> to vector<8x4xf32>
    %cst_57 = arith.constant dense<0.000000e+00> : vector<8x256xf32>
    %64 = tpu.matmul %63, %61, %cst_57 {dimension_numbers = #tpu.dot_dimension_numbers<[1], [0], [0], [1], [0, 0, 1, 1], [], []>} : vector<8x4xf32>, vector<4x256xf32>, vector<8x256xf32> -> vector<8x256xf32>
    %65 = arith.addf %56, %64 : vector<8x256xf32>
    %c0_58 = arith.constant 0 : index
    %c17_59 = arith.constant 17 : index
    %66 = vector.load %arg6[%c0_58, %c17_59] : memref<4x290xf32, #tpu.memory_space<vmem>>, vector<4x256xf32>
    %c0_60 = arith.constant 0 : index
    %c1_61 = arith.constant 1 : index
    %c2_62 = arith.constant 2 : index
    %c0_63 = arith.constant 0 : index
    %c0_64 = arith.constant 0 : index
    %67 = vector.load %arg3[%c0_60, %c1_61, %c2_62, %c0_63, %c0_64] : memref<2x2x4x8x4xf32, #tpu.memory_space<vmem>>, vector<1x1x1x8x4xf32>
    %68 = vector.shape_cast %67 : vector<1x1x1x8x4xf32> to vector<8x4xf32>
    %cst_65 = arith.constant dense<0.000000e+00> : vector<8x256xf32>
    %69 = tpu.matmul %68, %66, %cst_65 {dimension_numbers = #tpu.dot_dimension_numbers<[1], [0], [0], [1], [0, 0, 1, 1], [], []>} : vector<8x4xf32>, vector<4x256xf32>, vector<8x256xf32> -> vector<8x256xf32>
    %70 = arith.addf %65, %69 : vector<8x256xf32>
    %c0_66 = arith.constant 0 : index
    %c18 = arith.constant 18 : index
    %71 = vector.load %arg6[%c0_66, %c18] : memref<4x290xf32, #tpu.memory_space<vmem>>, vector<4x256xf32>
    %c14_i32_67 = arith.constant 14 : i32
    %72 = vector.broadcast %c14_i32_67 : i32 to vector<4x256xi32>
    %73 = arith.cmpi sle, %19, %72 : vector<4x256xi32>
    %cst_68 = arith.constant 0.000000e+00 : f32
    %74 = vector.broadcast %cst_68 : f32 to vector<4x256xf32>
    %75 = arith.select %73, %71, %74 : vector<4x256xi1>, vector<4x256xf32>
    %c0_69 = arith.constant 0 : index
    %c1_70 = arith.constant 1 : index
    %c3_71 = arith.constant 3 : index
    %c0_72 = arith.constant 0 : index
    %c0_73 = arith.constant 0 : index
    %76 = vector.load %arg3[%c0_69, %c1_70, %c3_71, %c0_72, %c0_73] : memref<2x2x4x8x4xf32, #tpu.memory_space<vmem>>, vector<1x1x1x8x4xf32>
    %77 = vector.shape_cast %76 : vector<1x1x1x8x4xf32> to vector<8x4xf32>
    %cst_74 = arith.constant dense<0.000000e+00> : vector<8x256xf32>
    %78 = tpu.matmul %77, %75, %cst_74 {dimension_numbers = #tpu.dot_dimension_numbers<[1], [0], [0], [1], [0, 0, 1, 1], [], []>} : vector<8x4xf32>, vector<4x256xf32>, vector<8x256xf32> -> vector<8x256xf32>
    %79 = arith.addf %70, %78 : vector<8x256xf32>
    %80 = vector.broadcast %20 : vector<8x1xf32> to vector<8x256xf32>
    %81 = arith.addf %79, %80 : vector<8x256xf32>
    %c0_75 = arith.constant 0 : index
    %c0_76 = arith.constant 0 : index
    %c0_77 = arith.constant 0 : index
    %c1_78 = arith.constant 1 : index
    %c0_79 = arith.constant 0 : index
    %82 = vector.load %arg5[%c0_75, %c0_76, %c0_77, %c1_78, %c0_79] : memref<1x8x2x2x256xf32, #tpu.memory_space<vmem>>, vector<1x8x1x1x256xf32>
    %83 = vector.shape_cast %82 : vector<1x8x1x1x256xf32> to vector<8x256xf32>
    %84 = vector.shape_cast %81 : vector<8x256xf32> to vector<1x8x1x1x256xf32>
    tpu.vector_store %arg5[%c0_75, %c0_76, %c0_77, %c1_78, %c0_79], %84 {strides = array<i32>} : memref<1x8x2x2x256xf32, #tpu.memory_space<vmem>>, vector<1x8x1x1x256xf32>,
    %c0_80 = arith.constant 0 : index
    %c16_81 = arith.constant 16 : index
    %85 = vector.load %arg6[%c0_80, %c16_81] : memref<4x290xf32, #tpu.memory_space<vmem>>, vector<4x256xf32>
    %c1_i32_82 = arith.constant 1 : i32
    %86 = vector.broadcast %c1_i32_82 : i32 to vector<4x256xi32>
    %87 = arith.cmpi sge, %19, %86 : vector<4x256xi32>
    %cst_83 = arith.constant 0.000000e+00 : f32
    %88 = vector.broadcast %cst_83 : f32 to vector<4x256xf32>
    %89 = arith.select %87, %85, %88 : vector<4x256xi1>, vector<4x256xf32>
    %c1_84 = arith.constant 1 : index
    %c0_85 = arith.constant 0 : index
    %c0_86 = arith.constant 0 : index
    %c0_87 = arith.constant 0 : index
    %c0_88 = arith.constant 0 : index
    %90 = vector.load %arg3[%c1_84, %c0_85, %c0_86, %c0_87, %c0_88] : memref<2x2x4x8x4xf32, #tpu.memory_space<vmem>>, vector<1x1x1x8x4xf32>
    %91 = vector.shape_cast %90 : vector<1x1x1x8x4xf32> to vector<8x4xf32>
    %cst_89 = arith.constant dense<0.000000e+00> : vector<8x256xf32>
    %92 = tpu.matmul %91, %89, %cst_89 {dimension_numbers = #tpu.dot_dimension_numbers<[1], [0], [0], [1], [0, 0, 1, 1], [], []>} : vector<8x4xf32>, vector<4x256xf32>, vector<8x256xf32> -> vector<8x256xf32>
    %c0_90 = arith.constant 0 : index
    %c17_91 = arith.constant 17 : index
    %93 = vector.load %arg6[%c0_90, %c17_91] : memref<4x290xf32, #tpu.memory_space<vmem>>, vector<4x256xf32>
    %c1_92 = arith.constant 1 : index
    %c0_93 = arith.constant 0 : index
    %c1_94 = arith.constant 1 : index
    %c0_95 = arith.constant 0 : index
    %c0_96 = arith.constant 0 : index
    %94 = vector.load %arg3[%c1_92, %c0_93, %c1_94, %c0_95, %c0_96] : memref<2x2x4x8x4xf32, #tpu.memory_space<vmem>>, vector<1x1x1x8x4xf32>
    %95 = vector.shape_cast %94 : vector<1x1x1x8x4xf32> to vector<8x4xf32>
    %cst_97 = arith.constant dense<0.000000e+00> : vector<8x256xf32>
    %96 = tpu.matmul %95, %93, %cst_97 {dimension_numbers = #tpu.dot_dimension_numbers<[1], [0], [0], [1], [0, 0, 1, 1], [], []>} : vector<8x4xf32>, vector<4x256xf32>, vector<8x256xf32> -> vector<8x256xf32>
    %97 = arith.addf %92, %96 : vector<8x256xf32>
    %c0_98 = arith.constant 0 : index
    %c32 = arith.constant 32 : index
    %98 = vector.load %arg6[%c0_98, %c32] : memref<4x290xf32, #tpu.memory_space<vmem>>, vector<4x256xf32>
    %c1_i32_99 = arith.constant 1 : i32
    %99 = vector.broadcast %c1_i32_99 : i32 to vector<4x256xi32>
    %100 = arith.cmpi sge, %19, %99 : vector<4x256xi32>
    %cst_100 = arith.constant 0.000000e+00 : f32
    %101 = vector.broadcast %cst_100 : f32 to vector<4x256xf32>
    %102 = arith.select %100, %98, %101 : vector<4x256xi1>, vector<4x256xf32>
    %c1_101 = arith.constant 1 : index
    %c0_102 = arith.constant 0 : index
    %c2_103 = arith.constant 2 : index
    %c0_104 = arith.constant 0 : index
    %c0_105 = arith.constant 0 : index
    %103 = vector.load %arg3[%c1_101, %c0_102, %c2_103, %c0_104, %c0_105] : memref<2x2x4x8x4xf32, #tpu.memory_space<vmem>>, vector<1x1x1x8x4xf32>
    %104 = vector.shape_cast %103 : vector<1x1x1x8x4xf32> to vector<8x4xf32>
    %cst_106 = arith.constant dense<0.000000e+00> : vector<8x256xf32>
    %105 = tpu.matmul %104, %102, %cst_106 {dimension_numbers = #tpu.dot_dimension_numbers<[1], [0], [0], [1], [0, 0, 1, 1], [], []>} : vector<8x4xf32>, vector<4x256xf32>, vector<8x256xf32> -> vector<8x256xf32>
    %106 = arith.addf %97, %105 : vector<8x256xf32>
    %c0_107 = arith.constant 0 : index
    %c33 = arith.constant 33 : index
    %107 = vector.load %arg6[%c0_107, %c33] : memref<4x290xf32, #tpu.memory_space<vmem>>, vector<4x256xf32>
    %c1_108 = arith.constant 1 : index
    %c0_109 = arith.constant 0 : index
    %c3_110 = arith.constant 3 : index
    %c0_111 = arith.constant 0 : index
    %c0_112 = arith.constant 0 : index
    %108 = vector.load %arg3[%c1_108, %c0_109, %c3_110, %c0_111, %c0_112] : memref<2x2x4x8x4xf32, #tpu.memory_space<vmem>>, vector<1x1x1x8x4xf32>
    %109 = vector.shape_cast %108 : vector<1x1x1x8x4xf32> to vector<8x4xf32>
    %cst_113 = arith.constant dense<0.000000e+00> : vector<8x256xf32>
    %110 = tpu.matmul %109, %107, %cst_113 {dimension_numbers = #tpu.dot_dimension_numbers<[1], [0], [0], [1], [0, 0, 1, 1], [], []>} : vector<8x4xf32>, vector<4x256xf32>, vector<8x256xf32> -> vector<8x256xf32>
    %111 = arith.addf %106, %110 : vector<8x256xf32>
    %112 = vector.broadcast %20 : vector<8x1xf32> to vector<8x256xf32>
    %113 = arith.addf %111, %112 : vector<8x256xf32>
    %c0_114 = arith.constant 0 : index
    %c0_115 = arith.constant 0 : index
    %c1_116 = arith.constant 1 : index
    %c0_117 = arith.constant 0 : index
    %c0_118 = arith.constant 0 : index
    %114 = vector.load %arg5[%c0_114, %c0_115, %c1_116, %c0_117, %c0_118] : memref<1x8x2x2x256xf32, #tpu.memory_space<vmem>>, vector<1x8x1x1x256xf32>
    %115 = vector.shape_cast %114 : vector<1x8x1x1x256xf32> to vector<8x256xf32>
    %116 = vector.shape_cast %113 : vector<8x256xf32> to vector<1x8x1x1x256xf32>
    tpu.vector_store %arg5[%c0_114, %c0_115, %c1_116, %c0_117, %c0_118], %116 {strides = array<i32>} : memref<1x8x2x2x256xf32, #tpu.memory_space<vmem>>, vector<1x8x1x1x256xf32>,
    %c0_119 = arith.constant 0 : index
    %c17_120 = arith.constant 17 : index
    %117 = vector.load %arg6[%c0_119, %c17_120] : memref<4x290xf32, #tpu.memory_space<vmem>>, vector<4x256xf32>
    %c1_121 = arith.constant 1 : index
    %c1_122 = arith.constant 1 : index
    %c0_123 = arith.constant 0 : index
    %c0_124 = arith.constant 0 : index
    %c0_125 = arith.constant 0 : index
    %118 = vector.load %arg3[%c1_121, %c1_122, %c0_123, %c0_124, %c0_125] : memref<2x2x4x8x4xf32, #tpu.memory_space<vmem>>, vector<1x1x1x8x4xf32>
    %119 = vector.shape_cast %118 : vector<1x1x1x8x4xf32> to vector<8x4xf32>
    %cst_126 = arith.constant dense<0.000000e+00> : vector<8x256xf32>
    %120 = tpu.matmul %119, %117, %cst_126 {dimension_numbers = #tpu.dot_dimension_numbers<[1], [0], [0], [1], [0, 0, 1, 1], [], []>} : vector<8x4xf32>, vector<4x256xf32>, vector<8x256xf32> -> vector<8x256xf32>
    %c0_127 = arith.constant 0 : index
    %c18_128 = arith.constant 18 : index
    %121 = vector.load %arg6[%c0_127, %c18_128] : memref<4x290xf32, #tpu.memory_space<vmem>>, vector<4x256xf32>
    %c14_i32_129 = arith.constant 14 : i32
    %122 = vector.broadcast %c14_i32_129 : i32 to vector<4x256xi32>
    %123 = arith.cmpi sle, %19, %122 : vector<4x256xi32>
    %cst_130 = arith.constant 0.000000e+00 : f32
    %124 = vector.broadcast %cst_130 : f32 to vector<4x256xf32>
    %125 = arith.select %123, %121, %124 : vector<4x256xi1>, vector<4x256xf32>
    %c1_131 = arith.constant 1 : index
    %c1_132 = arith.constant 1 : index
    %c1_133 = arith.constant 1 : index
    %c0_134 = arith.constant 0 : index
    %c0_135 = arith.constant 0 : index
    %126 = vector.load %arg3[%c1_131, %c1_132, %c1_133, %c0_134, %c0_135] : memref<2x2x4x8x4xf32, #tpu.memory_space<vmem>>, vector<1x1x1x8x4xf32>
    %127 = vector.shape_cast %126 : vector<1x1x1x8x4xf32> to vector<8x4xf32>
    %cst_136 = arith.constant dense<0.000000e+00> : vector<8x256xf32>
    %128 = tpu.matmul %127, %125, %cst_136 {dimension_numbers = #tpu.dot_dimension_numbers<[1], [0], [0], [1], [0, 0, 1, 1], [], []>} : vector<8x4xf32>, vector<4x256xf32>, vector<8x256xf32> -> vector<8x256xf32>
    %129 = arith.addf %120, %128 : vector<8x256xf32>
    %c0_137 = arith.constant 0 : index
    %c33_138 = arith.constant 33 : index
    %130 = vector.load %arg6[%c0_137, %c33_138] : memref<4x290xf32, #tpu.memory_space<vmem>>, vector<4x256xf32>
    %c1_139 = arith.constant 1 : index
    %c1_140 = arith.constant 1 : index
    %c2_141 = arith.constant 2 : index
    %c0_142 = arith.constant 0 : index
    %c0_143 = arith.constant 0 : index
    %131 = vector.load %arg3[%c1_139, %c1_140, %c2_141, %c0_142, %c0_143] : memref<2x2x4x8x4xf32, #tpu.memory_space<vmem>>, vector<1x1x1x8x4xf32>
    %132 = vector.shape_cast %131 : vector<1x1x1x8x4xf32> to vector<8x4xf32>
    %cst_144 = arith.constant dense<0.000000e+00> : vector<8x256xf32>
    %133 = tpu.matmul %132, %130, %cst_144 {dimension_numbers = #tpu.dot_dimension_numbers<[1], [0], [0], [1], [0, 0, 1, 1], [], []>} : vector<8x4xf32>, vector<4x256xf32>, vector<8x256xf32> -> vector<8x256xf32>
    %134 = arith.addf %129, %133 : vector<8x256xf32>
    %c0_145 = arith.constant 0 : index
    %c34 = arith.constant 34 : index
    %135 = vector.load %arg6[%c0_145, %c34] : memref<4x290xf32, #tpu.memory_space<vmem>>, vector<4x256xf32>
    %c14_i32_146 = arith.constant 14 : i32
    %136 = vector.broadcast %c14_i32_146 : i32 to vector<4x256xi32>
    %137 = arith.cmpi sle, %19, %136 : vector<4x256xi32>
    %cst_147 = arith.constant 0.000000e+00 : f32
    %138 = vector.broadcast %cst_147 : f32 to vector<4x256xf32>
    %139 = arith.select %137, %135, %138 : vector<4x256xi1>, vector<4x256xf32>
    %c1_148 = arith.constant 1 : index
    %c1_149 = arith.constant 1 : index
    %c3_150 = arith.constant 3 : index
    %c0_151 = arith.constant 0 : index
    %c0_152 = arith.constant 0 : index
    %140 = vector.load %arg3[%c1_148, %c1_149, %c3_150, %c0_151, %c0_152] : memref<2x2x4x8x4xf32, #tpu.memory_space<vmem>>, vector<1x1x1x8x4xf32>
    %141 = vector.shape_cast %140 : vector<1x1x1x8x4xf32> to vector<8x4xf32>
    %cst_153 = arith.constant dense<0.000000e+00> : vector<8x256xf32>
    %142 = tpu.matmul %141, %139, %cst_153 {dimension_numbers = #tpu.dot_dimension_numbers<[1], [0], [0], [1], [0, 0, 1, 1], [], []>} : vector<8x4xf32>, vector<4x256xf32>, vector<8x256xf32> -> vector<8x256xf32>
    %143 = arith.addf %134, %142 : vector<8x256xf32>
    %144 = vector.broadcast %20 : vector<8x1xf32> to vector<8x256xf32>
    %145 = arith.addf %143, %144 : vector<8x256xf32>
    %c0_154 = arith.constant 0 : index
    %c0_155 = arith.constant 0 : index
    %c1_156 = arith.constant 1 : index
    %c1_157 = arith.constant 1 : index
    %c0_158 = arith.constant 0 : index
    %146 = vector.load %arg5[%c0_154, %c0_155, %c1_156, %c1_157, %c0_158] : memref<1x8x2x2x256xf32, #tpu.memory_space<vmem>>, vector<1x8x1x1x256xf32>
    %147 = vector.shape_cast %146 : vector<1x8x1x1x256xf32> to vector<8x256xf32>
    %148 = vector.shape_cast %145 : vector<8x256xf32> to vector<1x8x1x1x256xf32>
    tpu.vector_store %arg5[%c0_154, %c0_155, %c1_156, %c1_157, %c0_158], %148 {strides = array<i32>} : memref<1x8x2x2x256xf32, #tpu.memory_space<vmem>>, vector<1x8x1x1x256xf32>,
    return
  }
  func.func @transform_0(%arg0: i32, %arg1: i32) -> (i32, i32, i32) {
    %c0_i32 = arith.constant 0 : i32
    %c0_i32_0 = arith.constant 0 : i32
    %c0_i32_1 = arith.constant 0 : i32
    return %arg0, %c0_i32, %c0_i32_0 : i32, i32, i32
  }
  func.func @transform_1(%arg0: i32, %arg1: i32) -> (i32, i32, i32, i32, i32) {
    %c0_i32 = arith.constant 0 : i32
    %c0_i32_0 = arith.constant 0 : i32
    %c0_i32_1 = arith.constant 0 : i32
    %c0_i32_2 = arith.constant 0 : i32
    %c0_i32_3 = arith.constant 0 : i32
    return %c0_i32, %c0_i32_0, %c0_i32_1, %arg1, %c0_i32_2 : i32, i32, i32, i32, i32
  }
  func.func @transform_2(%arg0: i32, %arg1: i32) -> (i32, i32) {
    %c0_i32 = arith.constant 0 : i32
    %c0_i32_0 = arith.constant 0 : i32
    return %arg1, %c0_i32 : i32, i32
  }
  func.func @transform_3(%arg0: i32, %arg1: i32) -> (i32, i32, i32, i32, i32) {
    %c0_i32 = arith.constant 0 : i32
    %c0_i32_0 = arith.constant 0 : i32
    %c0_i32_1 = arith.constant 0 : i32
    %c0_i32_2 = arith.constant 0 : i32
    return %arg0, %arg1, %c0_i32, %c0_i32_0, %c0_i32_1 : i32, i32, i32, i32, i32
  }
}

</mosaic_0001>

<bundles_post_ra>
// kernel: tpu_custom_call.1
= control target key start
LH: loop header
LB: loop body
LE: loop exit
PB: predicated region body
PF: predicated region fallthrough
CT: control target
= control target key end

     0   :  { %8 = vsyncpa [#allocation4], 0  ;;  %s3153_s0 = inlined_call_operand.vmem [shape: f32[2,4,256], index: 0, kind: input, shape index: {}]   ;;  %s3154_s1 = inlined_call_operand.vmem [shape: f32[2,2,4,8,4], index: 1, kind: input, shape index: {}]   ;;  %s3155_s2 = inlined_call_operand.vmem [shape: f32[8,1], index: 2, kind: input, shape index: {}]   ;;  %s3156_s3 = inlined_call_operand.hbm [shape: f32[2,8,2,2,256], index: 3, kind: output, shape index: {}]  }
   0x1   :  { %10 = vsyncpa [#allocation4 + $0x1], 0  ;;  %s2554_s12 = smov 0   ;;  %s2556_s13 = smov 0  }
   0x2   :  { %s2558_s14 = smov 0   ;;  %s2560_s15 = smov 0  }
   0x3   :  { %s2562_s16 = smov 0   ;;  %s2564_s17 = smov 0  }
   0x4 LB: > { %s2259_s18 = sadd.s32 4294967295, %s2517_s17   ;;  %s2260_s19 = sadd.s32 4294967294, %s2517_s17   ;;  %s2517_s17 = sphi %s2564_s17, %s16_s17   ;;  %s2513_s16 = sphi %s2562_s16, %s3173_s16   ;;  %s2509_s15 = sphi %s2560_s15, %s3172_s15   ;;  %s2505_s14 = sphi %s2558_s14, %s3171_s14   ;;  %s2501_s13 = sphi %s2556_s13, %s3170_s13   ;;  %s2497_s12 = sphi %s2554_s12, %s3169_s12  }
   0x5   : > { %s28_s20 = sadd.s32 1, %s2513_s16  ;;  %s115_s21 = sadd.s32 1, %s2505_s14 }
   0x6   : > { %p30_p0 = scmp.ge.s32.totalorder %s28_s20, 2  ;;  %p125_p1 = scmp.ne.s32.totalorder %s2505_s14, %s2501_s13 }
   0x7   : > { %p126_p2 = scmp.eq.s32.totalorder %s2259_s18, 1  ;;  %p131_p3 = scmp.ne.s32.totalorder %s2501_s13, %s2497_s12 }
   0x8   : > { %s3175_s20 = smov (%p30_p0, %s28_s20), 0  ;;  %p132_p5 = scmp.eq.s32.totalorder %s2260_s19, 1 }
   0x9   : > { %p2594_p4 = por %p126_p2, %p125_p1  ;;  %s110_s23 = ssub.s32 %s2513_s16, %s3175_s20 }
   0xa   : > { %p2265_p6 = scmp.ge.s32.totalorder %s2517_s17, 1  ;;  %p113_p7 = scmp.eq.s32.totalorder %s110_s23, 0 }
   0xb   : > { %p2601_p8 = por %p132_p5, %p131_p3  ;;  %p172_p9 = scmp.lt.s32.totalorder %s2517_s17, 3 }
   0xc   : > { %s2607_s25 = scalar_select %p113_p7, %s2505_s14, %s115_s21  }
   0xd   : > { %p173_p10 = pnand %p2265_p6, %p172_p9 }
   0xe   : > { %p204_p11 = scmp.lt.s32.totalorder (!%p173_p10), %s2509_s15, 1  ;;  %s2520_s4 = smov (!%p173_p10), 17  }
   0xf   : > { %176 = sbr.rel (%p173_p10) target bundleno = 580 (0x244), region = 32  ;;  %s2521_s5 = smov (!%p173_p10), 111  }
  0x10   : > { %s2522_s6 = smov (!%p173_p10), 127   ;;  %s2523_s7 = smov (!%p173_p10), 112  }
  0x11   : > { %s2524_s8 = smov (!%p173_p10), 110   ;;  %s2525_s9 = smov (!%p173_p10), 126  }
  0x12   : > { %s2526_s10 = smov (!%p173_p10), 95   ;;  %s2527_s11 = smov (!%p173_p10), 96  }
  0x13   : > { %s2529_s21 = smov (!%p173_p10), 94   ;;  %s201_s19 = sand.u32 (!%p173_p10), 1, %s2501_s13  }
  0x14   : > { %vm222_vm0 = vcmask 134144   ;;  %vm224_vm1 = vcmask 273544   ;;  %v2519_v0 = vmov 0.0   ;;  %s205_s26 = scalar_select %p204_p11, %s2509_s15, 1  ;;  %v240_v2 = vlaneseq  ;;  %v276_v26 = vld [vmem:[%s3154_s1] sm:$0xff]  ;;  %v2269_v57 = vld [vmem:[%s3154_s1 + $0x8] sm:$0xff] }
  0x15   : > { %223 = vst.msk [vmem:[#allocation2] sm:$0xf] %vm222_vm0, %v2519_v0  ;;  %363 = vmatprep.mubr.f32.mxu0 %v2519_v0  ;;  %443 = vmatprep.mubr.f32.mxu1 %v2519_v0  ;;  %vm235_vm2 = vcmask 1043592   ;;  %vm236_vm3 = vcmask 1047556   ;;  %vm231_vm4 = vcmask 138240   ;;  %vm294_vm7 = vcmask 1043456  }
  0x16   : > { %225 = vst.msk [vmem:[#allocation2 + $0x8] sm:$0xf] %vm224_vm1, %v2519_v0  ;;  %s2368_s27 = sshll.u32 %s205_s26, 3  ;;  %v2620_v3 = vand.u32 127, %v240_v2  ;;  %vm237_vm5 = vmor %vm236_vm3, %vm235_vm2  ;;  %vm290_vm9 = vcmask 31744   ;;  %v2528_v28 = vmov 0  }
  0x17   : > { %s208_s30 = scalar_lea.vmem %s3153_s0, %s2368_s27  ;;  %2439 = vset.pattern.permute.xlu0 %v2528_v28  ;;  %v267_v30 = vld [vmem:[%s3155_s2] sm:$0xff]  ;;  %vm287_vm10 = vcmask 1039360   ;;  %vm461_vm11 = vcmask 916480   ;;  %vm749_vm12 = vcmask 1031168   ;;  %vm565_vm15 = vcmask 908288   ;;  %s2369_s26 = sshll.u32 %s2509_s15, 10 }
  0x18   : > { %v226_v1 = vld [vmem:[%s208_s30] sm:$0xff]  ;;  %v2624_v7 = vadd.s32 128, %v2620_v3  ;;  %v247_v9 = vand.u32 15, %v2620_v3  ;;  %vm1397_vm1 = vcmask 785408   ;;  %vm1501_vm2 = vcmask 777216   ;;  %s3084_s15 = scalar_lea.hbm %s3156_s3, %s2369_s26  ;;  %s3108_s30 = scalar_lea.sflag [#allocation4], %s201_s19 }
  0x19   : > { %228 = vrot.lane.b32.xlu0 %v226_v1, %s2520_s4  ;;  %v2276_v1 = vld [vmem:[%s3154_s1 + $0x10] sm:$0xff]  ;;  %vm1955_vm3 = vcmask 769024  }
  0x1a   : > { %v254_v8 = vand.u32 15, %v2624_v7  ;;  %vm2644_vm8 = vcmp.ge.s32.totalorder %v247_v9, 1  ;;  %vm2783_vm13 = vcmp.le.s32.totalorder %v247_v9, 14  ;;  %v2292_v7 = vld [vmem:[%s3154_s1 + $0x28] sm:$0xff] }
  0x1c   : > { %vm2634_vm6 = vcmp.ge.s32.totalorder %v254_v8, 1  ;;  %vm2789_vm14 = vcmp.le.s32.totalorder %v254_v8, 14 }
  0x8b   : > { %v229_v4 = vpop.permute.xlu0 %228 }
  0x8c   : > { %v230_v5 = vrot.slane %v229_v4, 4 }
  0x8e   : > { %v232_v6 = vsel %vm231_vm4, %v230_v5, %v229_v4  ;;  %239 = vst.msk [vmem:[#allocation2 + $0x8] sm:$0xf] %vm222_vm0, %v230_v5  ;;  %vm1030_vm0 = vcmask 900096   ;;  %vm2967_vm4 = vcmp.lt.s32.totalorder %v240_v2, 256 }
  0x8f   : > { %238 = vst.msk [vmem:[#allocation2] sm:$0xff] %vm237_vm5, %v232_v6 }
  0x95   : > { %v553_v10 = vld [vmem:[#allocation2 + $0x8] sm:$0xf] }
  0x96   : > { %v277_v11 = vld [vmem:[#allocation2 + $0x8] sm:$0xf]  ;;  %563 = vrot.lane.b32.xlu0 %v553_v10, %s2521_s5  ;;  %v2630_v12 = vld [vmem:[#allocation2] sm:$0xff] }
  0x97   : > { %285 = vrot.lane.b32.xlu1 %v277_v11, %s2522_s6  ;;  %v2640_v14 = vcombine.high %v2630_v12, %v2630_v12  ;;  %v735_v16 = vld [vmem:[#allocation2 + $0x8] sm:$0xf]  ;;  %v274_v19 = vsel %vm2644_vm8, %v2630_v12, 0.0 }
  0x98   : > { %v451_v17 = vld [vmem:[#allocation2 + $0x8] sm:$0xf] }
  0x99   : > { %v275_v18 = vsel %vm2634_vm6, %v2640_v14, 0.0  ;;  %v1020_v20 = vld [vmem:[#allocation2 + $0x8] sm:$0xf] }
  0x9a   : > { %842 = vrot.lane.b32.xlu0 %v735_v16, %s2522_s6  ;;  %2273 = vmatprep.subr.msk.mxu1 %vm294_vm7, %v275_v18  ;;  %v1489_v21 = vld [vmem:[#allocation2 + $0x8] sm:$0xf]  ;;  %v2299_v18 = vld [vmem:[%s3154_s1 + $0x30] sm:$0xff] }
  0x9b   : > { %459 = vrot.lane.b32.xlu1 %v451_v17, %s2523_s7  ;;  %2274 = vmatpush1.msk.msra.mxu1 %vm294_vm7, %v274_v19  ;;  %v925_v22 = vld [vmem:[#allocation2 + $0x8] sm:$0xf] }
  0x9c   : > { %v1663_v23 = vld [vmem:[#allocation2 + $0x8] sm:$0xf]  ;;  %2275 = vmatmul.mubr.msk.f32.vlgmr.msra.gmra.mxu1 %vm290_vm9, %v276_v26 }
  0x9d   : > { %v1200_v24 = vld [vmem:[#allocation2 + $0x8] sm:$0xf]  ;;  %639 = vmatprep.mubr.f32.mxu1 %v2519_v0 }
  0x9e   : > { %1028 = vrot.lane.b32.xlu0 %v1020_v20, %s2524_s8  ;;  %v1387_v25 = vld [vmem:[#allocation2 + $0x8] sm:$0xf] }
  0x9f   : > { %747 = vrot.lane.b32.xlu1 %v735_v16, %s2525_s9  ;;  %v1850_v27 = vld [vmem:[#allocation2 + $0x8] sm:$0xf] }
  0xa0   : > { %v1945_v29 = vld [vmem:[#allocation2 + $0x8] sm:$0xf] }
  0xa2   : > { %1499 = vrot.lane.b32.xlu0 %v1489_v21, %s2526_s10 }
  0xa3   : > { %935 = vrot.lane.b32.xlu1 %v925_v22, %s2521_s5 }
  0xa6   : > { %1767 = vrot.lane.b32.xlu0 %v1663_v23, %s2521_s5 }
  0xa7   : > { %1224 = vrot.lane.b32.xlu1 %v1200_v24, %s2521_s5 }
  0xaa   : > { %455 = vrot.lane.b32.xlu0 %v2630_v12, %s2523_s7 }
  0xab   : > { %1208 = vrot.lane.b32.xlu1 %v1200_v24, %s2523_s7 }
  0xae   : > { %743 = vrot.lane.b32.xlu0 %v2630_v12, %s2525_s9 }
  0xaf   : > { %1395 = vrot.lane.b32.xlu1 %v1387_v25, %s2527_s11 }
  0xb2   : > { %931 = vrot.lane.b32.xlu0 %v2630_v12, %s2521_s5 }
  0xb3   : > { %1673 = vrot.lane.b32.xlu1 %v1663_v23, %s2524_s8  ;;  %v2280_v23 = vld [vmem:[%s3154_s1 + $0x18] sm:$0xff] }
  0xb6   : > { %1220 = vrot.lane.b32.xlu0 %v2630_v12, %s2521_s5 }
  0xb7   : > { %281 = vrot.lane.b32.xlu1 %v2630_v12, %s2522_s6 }
  0xba   : > { %1391 = vrot.lane.b32.xlu0 %v2630_v12, %s2527_s11 }
  0xbb   : > { %559 = vrot.lane.b32.xlu1 %v2630_v12, %s2521_s5 }
  0xbe   : > { %1669 = vrot.lane.b32.xlu0 %v2630_v12, %s2524_s8 }
  0xbf   : > { %838 = vrot.lane.b32.xlu1 %v2630_v12, %s2522_s6 }
  0xc2   : > { %283 = vrot.lane.b32.xlu0 %v2640_v14, %s2522_s6 }
  0xc3   : > { %1024 = vrot.lane.b32.xlu1 %v2630_v12, %s2524_s8 }
  0xc6   : > { %457 = vrot.lane.b32.xlu0 %v2640_v14, %s2523_s7 }
  0xc7   : > { %1204 = vrot.lane.b32.xlu1 %v2630_v12, %s2523_s7 }
  0xca   : > { %745 = vrot.lane.b32.xlu0 %v2640_v14, %s2525_s9 }
  0xcb   : > { %1495 = vrot.lane.b32.xlu1 %v2630_v12, %s2526_s10 }
  0xce   : > { %933 = vrot.lane.b32.xlu0 %v2640_v14, %s2521_s5 }
  0xcf   : > { %1763 = vrot.lane.b32.xlu1 %v2630_v12, %s2521_s5 }
  0xd2   : > { %1856 = vrot.lane.b32.xlu0 %v2630_v12, %s2526_s10 }
  0xd3   : > { %561 = vrot.lane.b32.xlu1 %v2640_v14, %s2521_s5 }
  0xd6   : > { %1222 = vrot.lane.b32.xlu0 %v2640_v14, %s2521_s5 }
  0xd7   : > { %840 = vrot.lane.b32.xlu1 %v2640_v14, %s2522_s6 }
  0xda   : > { %1206 = vrot.lane.b32.xlu0 %v2640_v14, %s2523_s7 }
  0xdb   : > { %1026 = vrot.lane.b32.xlu1 %v2640_v14, %s2524_s8 }
  0xde   : > { %1393 = vrot.lane.b32.xlu0 %v2640_v14, %s2527_s11 }
  0xdf   : > { %1860 = vrot.lane.b32.xlu1 %v1850_v27, %s2526_s10 }
  0xe2   : > { %1671 = vrot.lane.b32.xlu0 %v2640_v14, %s2524_s8 }
  0xe3   : > { %1497 = vrot.lane.b32.xlu1 %v2640_v14, %s2526_s10 }
  0xe6   : > { %1858 = vrot.lane.b32.xlu0 %v2640_v14, %s2526_s10 }
  0xe7   : > { %1765 = vrot.lane.b32.xlu1 %v2640_v14, %s2521_s5  ;;  %s2531_s5 = smov [#allocation3]  }
  0xe8   : > { %s2445_s6 = sshll.u32 %s2531_s5, 4  ;;  %s2446_s6 = int_to_ptr.vmem [resolvable:$false] %s2445_s6 }
  0xe9   : > { %s2447_s7 = scalar_lea.vmem %s2446_s6, 2048 }
  0xea   : > { %1953 = vrot.lane.b32.xlu0 %v1945_v29, %s2529_s21 }
  0xeb   : > { %1951 = vrot.lane.b32.xlu1 %v2640_v14, %s2529_s21 }
  0xee   : > { %650 = vperm.xlu0 %2439, %v267_v30   ;;  %v2291_v30 = vld [vmem:[%s3154_s1 + $0x20] sm:$0xff] }
  0xef   : > { %1949 = vrot.lane.b32.xlu1 %v2630_v12, %s2529_s21  ;;  %s2266_s21 = sshll.u32 %s201_s19, 6 }
  0xf0   : > { %s2976_s23 = scalar_lea.vmem [#allocation3], %s2266_s21 }
  0xf1   : > { %s2141_s27 = sshll.u32 %s2976_s23, 4  ;;  %s3086_s27 = int_to_ptr.vmem [resolvable:$true] %s2141_s27 }
  0xf2   : > { %s2441_s4 = scalar_lea.vmem %s3086_s27, 1024  ;;  %p2448_p1 = scmp.lt.s32.totalorder %s3086_s27, %s2446_s6 }
  0xf3   : > { %p2442_p12 = scmp.ne.s32.totalorder %s3086_s27, %s2441_s4  ;;  %p2449_p2 = scmp.lt.s32.totalorder %s2447_s7, %s2441_s4 }
  0xf5   : > { %p2443_p13 = pnand %p2442_p12, %p2594_p4  ;;  %p2450_p3 = por %p2449_p2, %p2448_p1 }
  0xf7   : > { %p2444_p0 = pneg %p2443_p13 }
  0xf9   : > { %p2451_p5 = pnand %p2450_p3, %p2444_p0 }
 0x108   : > { %v2734_v31 = vpop.permute.xlu0 %563 }
 0x109   : > { %v286_v32 = vpop.permute.xlu1 %285 }
 0x10c   : > { %v2736_v33 = vpop.permute.xlu0 %842 }
 0x10d   : > { %v460_v34 = vpop.permute.xlu1 %459 }
 0x110   : > { %v2738_v35 = vpop.permute.xlu0 %1028 }
 0x111   : > { %v748_v36 = vpop.permute.xlu1 %747 }
 0x114   : > { %v2740_v37 = vpop.permute.xlu0 %1499 }
 0x115   : > { %v936_v38 = vpop.permute.xlu1 %935 }
 0x118   : > { %v2742_v39 = vpop.permute.xlu0 %1767 }
 0x119   : > { %v2744_v40 = vpop.permute.xlu1 %1224 }
 0x11c   : > { %v456_v42 = vpop.permute.xlu0 %455 }
 0x11d   : > { %v2746_v41 = vpop.permute.xlu1 %1208 }
 0x120   : > { %v744_v44 = vpop.permute.xlu0 %743 }
 0x121   : > { %v2748_v43 = vpop.permute.xlu1 %1395 }
 0x124   : > { %v932_v46 = vpop.permute.xlu0 %931 }
 0x125   : > { %v2750_v45 = vpop.permute.xlu1 %1673 }
 0x128   : > { %v2752_v47 = vpop.permute.xlu0 %1220 }
 0x129   : > { %v282_v48 = vpop.permute.xlu1 %281 }
 0x12c   : > { %v2754_v49 = vpop.permute.xlu0 %1391 }
 0x12d   : > { %v560_v50 = vpop.permute.xlu1 %559 }
 0x130   : > { %v2756_v51 = vpop.permute.xlu0 %1669 }
 0x131   : > { %v839_v52 = vpop.permute.xlu1 %838 }
 0x134   : > { %v284_v54 = vpop.permute.xlu0 %283 }
 0x135   : > { %v2758_v53 = vpop.permute.xlu1 %1024  ;;  %v289_v55 = vsel %vm287_vm10, %v284_v54, %v286_v32  ;;  %v288_v56 = vsel %vm287_vm10, %v282_v48, %v284_v54 }
 0x136   : > { %2270 = vmatprep.subr.msk.mxu0 %vm294_vm7, %v289_v55 }
 0x137   : > { %2271 = vmatpush1.msk.msra.mxu0 %vm294_vm7, %v288_v56 }
 0x138   : > { %v458_v59 = vpop.permute.xlu0 %457  ;;  %2272 = vmatmul.mubr.msk.f32.vlgmr.msra.gmra.mxu0 %vm290_vm9, %v2269_v57 }
 0x139   : > { %v2767_v58 = vpop.permute.xlu1 %1204  ;;  %v462_v60 = vsel %vm461_vm11, %v456_v42, %v458_v59  ;;  %v463_v61 = vsel %vm461_vm11, %v458_v59, %v460_v34  ;;  %543 = vmatprep.mubr.f32.mxu0 %v2519_v0 }
 0x13a   : > { %v466_v62 = vsel %vm2644_vm8, %v462_v60, 0.0  ;;  %v467_v63 = vsel %vm2634_vm6, %v463_v61, 0.0  ;;  %v2340_v61 = vld [vmem:[%s3154_s1 + $0x68] sm:$0xff] }
 0x13b   : > { %2277 = vmatprep.subr.msk.mxu0 %vm294_vm7, %v467_v63 }
 0x13c   : > { %2278 = vmatpush1.msk.msra.mxu0 %vm294_vm7, %v466_v62  ;;  %v746_v10 = vpop.permute.xlu0 %745 }
 0x13d   : > { %v2793_v6 = vpop.permute.xlu1 %1495  ;;  %v750_v11 = vsel %vm749_vm12, %v744_v44, %v746_v10  ;;  %v751_v12 = vsel %vm749_vm12, %v746_v10, %v748_v36  ;;  %2279 = vmatmul.mubr.msk.f32.vlgmr.msra.gmra.mxu0 %vm290_vm9, %v2276_v1 }
 0x13e   : > { %v754_v3 = vsel %vm2783_vm13, %v750_v11, 0.0  ;;  %v755_v9 = vsel %vm2789_vm14, %v751_v12, 0.0  ;;  %831 = vmatprep.mubr.f32.mxu0 %v2519_v0  ;;  %v2339_v11 = vld [vmem:[%s3154_s1 + $0x60] sm:$0xff] }
 0x13f   : > { %2293 = vmatprep.subr.msk.mxu0 %vm294_vm7, %v755_v9 }
 0x140   : > { %2294 = vmatpush1.msk.msra.mxu0 %vm294_vm7, %v754_v3  ;;  %v934_v14 = vpop.permute.xlu0 %933  ;;  %v2347_v3 = vld [vmem:[%s3154_s1 + $0x70] sm:$0xff] }
 0x141   : > { %v2806_v8 = vpop.permute.xlu1 %1763  ;;  %v937_v16 = vsel %vm565_vm15, %v932_v46, %v934_v14  ;;  %v938_v17 = vsel %vm565_vm15, %v934_v14, %v936_v38  ;;  %2295 = vmatmul.mubr.msk.f32.vlgmr.msra.gmra.mxu0 %vm290_vm9, %v2292_v7  ;;  %v2303_v46 = vld [vmem:[%s3154_s1 + $0x38] sm:$0xff] }
 0x142   : > { %2300 = vmatprep.subr.msk.mxu0 %vm294_vm7, %v938_v17  ;;  %1010 = vmatprep.mubr.f32.mxu0 %v2519_v0  ;;  %v2351_v14 = vld [vmem:[%s3154_s1 + $0x78] sm:$0xff] }
 0x143   : > { %2301 = vmatpush1.msk.msra.mxu0 %vm294_vm7, %v937_v16 }
 0x144   : > { %v2818_v20 = vpop.permute.xlu0 %1856 }
 0x145   : > { %v562_v19 = vpop.permute.xlu1 %561  ;;  %2302 = vmatmul.mubr.msk.f32.vlgmr.msra.gmra.mxu0 %vm290_vm9, %v2299_v18 }
 0x146   : > { %v566_v21 = vsel %vm565_vm15, %v560_v50, %v562_v19  ;;  %v567_v22 = vsel %vm565_vm15, %v562_v19, %v2734_v31  ;;  %1299 = vmatprep.mubr.f32.mxu0 %v2519_v0  ;;  %v2316_v31 = vld [vmem:[%s3154_s1 + $0x48] sm:$0xff] }
 0x147   : > { %2281 = vmatprep.subr.msk.mxu1 %vm294_vm7, %v567_v22 }
 0x148   : > { %2282 = vmatpush1.msk.msra.mxu1 %vm294_vm7, %v566_v21  ;;  %v1223_v25 = vpop.permute.xlu0 %1222 }
 0x149   : > { %v841_v24 = vpop.permute.xlu1 %840  ;;  %2283 = vmatmul.mubr.msk.f32.vlgmr.msra.gmra.mxu1 %vm290_vm9, %v2280_v23  ;;  %v1226_v28 = vsel %vm565_vm15, %v2752_v47, %v1223_v25  ;;  %v1227_v29 = vsel %vm565_vm15, %v1223_v25, %v2744_v40  ;;  %v2530_v25 = vmov 1966171168  }
 0x14a   : > { %v844_v26 = vsel %vm287_vm10, %v839_v52, %v841_v24  ;;  %v845_v27 = vsel %vm287_vm10, %v841_v24, %v2736_v33  ;;  %917 = vmatprep.mubr.f32.mxu1 %v2519_v0  ;;  %2317 = vmatprep.subr.msk.mxu0 %vm294_vm7, %v1227_v29 }
 0x14b   : > { %2296 = vmatprep.subr.msk.mxu1 %vm294_vm7, %v845_v27  ;;  %2318 = vmatpush1.msk.msra.mxu0 %vm294_vm7, %v1226_v28 }
 0x14c   : > { %2297 = vmatpush1.msk.msra.mxu1 %vm294_vm7, %v844_v26  ;;  %v1207_v33 = vpop.permute.xlu0 %1206  ;;  %2319 = vmatmul.mubr.msk.f32.vlgmr.msra.gmra.mxu0 %vm290_vm9, %v2316_v31  ;;  %v660_v26 = vunpack.c.l.s4 %v2530_v25 }
 0x14d   : > { %v1027_v32 = vpop.permute.xlu1 %1026  ;;  %2298 = vmatmul.mubr.msk.f32.vlgmr.msra.gmra.mxu1 %vm290_vm9, %v2291_v30  ;;  %v1211_v38 = vsel %vm461_vm11, %v1207_v33, %v2746_v41  ;;  %v1210_v44 = vsel %vm461_vm11, %v2767_v58, %v1207_v33  ;;  %1479 = vmatprep.mubr.f32.mxu0 %v2519_v0 }
 0x14e   : > { %v1031_v34 = vsel %vm1030_vm0, %v2758_v53, %v1027_v32  ;;  %v1032_v36 = vsel %vm1030_vm0, %v1027_v32, %v2738_v35  ;;  %1112 = vmatprep.mubr.f32.mxu1 %v2519_v0  ;;  %v1215_v35 = vsel %vm2634_vm6, %v1211_v38, 0.0  ;;  %v1214_v48 = vsel %vm2644_vm8, %v1210_v44, 0.0 }
 0x14f   : > { %v1035_v40 = vsel %vm2783_vm13, %v1031_v34, 0.0  ;;  %v1036_v42 = vsel %vm2789_vm14, %v1032_v36, 0.0  ;;  %v661_v31 = vunpack.c.0.s8 %v660_v26  ;;  %v663_v32 = vshrl.u32 %v240_v2, 7 }
 0x150   : > { %2304 = vmatprep.subr.msk.mxu1 %vm294_vm7, %v1036_v42  ;;  %v1394_v47 = vpop.permute.xlu0 %1393 }
 0x151   : > { %v1861_v41 = vpop.permute.xlu1 %1860  ;;  %2305 = vmatpush1.msk.msra.mxu1 %vm294_vm7, %v1035_v40  ;;  %v1398_v50 = vsel %vm1397_vm1, %v2754_v49, %v1394_v47  ;;  %v1399_v52 = vsel %vm1397_vm1, %v1394_v47, %v2748_v43  ;;  %v2315_v49 = vld [vmem:[%s3154_s1 + $0x40] sm:$0xff]  ;;  %v2323_v43 = vld [vmem:[%s3154_s1 + $0x50] sm:$0xff]  ;;  %v2959_v44 = vsub.s32 %v661_v31, %v663_v32 }
 0x152   : > { %2320 = vmatprep.subr.msk.mxu1 %vm294_vm7, %v1215_v35  ;;  %2306 = vmatmul.mubr.msk.f32.vlgmr.msra.gmra.mxu1 %vm290_vm9, %v2303_v46  ;;  %v1402_v53 = vsel %vm2644_vm8, %v1398_v50, 0.0  ;;  %v1403_v54 = vsel %vm2634_vm6, %v1399_v52, 0.0 }
 0x153   : > { %2321 = vmatpush1.msk.msra.mxu1 %vm294_vm7, %v1214_v48  ;;  %1379 = vmatprep.mubr.f32.mxu1 %v2519_v0 }
 0x154   : > { %2324 = vmatprep.subr.msk.mxu0 %vm294_vm7, %v1403_v54  ;;  %v1672_v13 = vpop.permute.xlu0 %1671 }
 0x155   : > { %v1498_v15 = vpop.permute.xlu1 %1497  ;;  %2325 = vmatpush1.msk.msra.mxu0 %vm294_vm7, %v1402_v53  ;;  %v1675_v57 = vsel %vm1030_vm0, %v2756_v51, %v1672_v13  ;;  %v1676_v58 = vsel %vm1030_vm0, %v1672_v13, %v2750_v45  ;;  %v2327_v51 = vld [vmem:[%s3154_s1 + $0x58] sm:$0xff] }
 0x156   : > { %v1502_v55 = vsel %vm1501_vm2, %v2793_v6, %v1498_v15  ;;  %v1503_v56 = vsel %vm1501_vm2, %v1498_v15, %v2740_v37  ;;  %2322 = vmatmul.mubr.msk.f32.vlgmr.msra.gmra.mxu1 %vm290_vm9, %v2315_v49  ;;  %v1679_v59 = vsel %vm2783_vm13, %v1675_v57, 0.0  ;;  %v1680_v60 = vsel %vm2789_vm14, %v1676_v58, 0.0  ;;  %2326 = vmatmul.mubr.msk.f32.vlgmr.msra.gmra.mxu0 %vm290_vm9, %v2323_v43 }
 0x157   : > { %2328 = vmatprep.subr.msk.mxu1 %vm294_vm7, %v1503_v56  ;;  %2341 = vmatprep.subr.msk.mxu0 %vm294_vm7, %v1680_v60 }
 0x158   : > { %2329 = vmatpush1.msk.msra.mxu1 %vm294_vm7, %v1502_v55  ;;  %2342 = vmatpush1.msk.msra.mxu0 %vm294_vm7, %v1679_v59  ;;  %v1859_v45 = vpop.permute.xlu0 %1858 }
 0x159   : > { %v1766_v37 = vpop.permute.xlu1 %1765  ;;  %1575 = vmatprep.mubr.f32.mxu1 %v2519_v0  ;;  %v1862_v1 = vsel %vm1501_vm2, %v2818_v20, %v1859_v45  ;;  %v1863_v6 = vsel %vm1501_vm2, %v1859_v45, %v1861_v41  ;;  %1756 = vmatprep.mubr.f32.mxu0 %v2519_v0 }
 0x15a   : > { %v1769_v62 = vsel %vm565_vm15, %v2806_v8, %v1766_v37  ;;  %v1770_v63 = vsel %vm565_vm15, %v1766_v37, %v2742_v39  ;;  %2348 = vmatprep.subr.msk.mxu0 %vm294_vm7, %v1863_v6  ;;  %2330 = vmatmul.mubr.msk.f32.vlgmr.msra.gmra.mxu1 %vm290_vm9, %v2327_v51 }
 0x15b   : > { %2344 = vmatprep.subr.msk.mxu1 %vm294_vm7, %v1770_v63  ;;  %2343 = vmatmul.mubr.msk.f32.vlgmr.msra.gmra.mxu0 %vm290_vm9, %v2340_v61 }
 0x15c   : > { %2345 = vmatpush1.msk.msra.mxu1 %vm294_vm7, %v1769_v62  ;;  %2349 = vmatpush1.msk.msra.mxu0 %vm294_vm7, %v1862_v1  ;;  %v1954_v10 = vpop.permute.xlu0 %1953  ;;  %v445_v18 = vpop.f32.mrf.mxu1 }
 0x15d   : > { %v1952_v39 = vpop.permute.xlu1 %1951  ;;  %1842 = vmatprep.mubr.f32.mxu1 %v2519_v0  ;;  %1935 = vmatprep.mubr.f32.mxu0 %v2519_v0 }
 0x15e   : > { %v1957_v12 = vsel %vm1955_vm3, %v1952_v39, %v1954_v10  ;;  %2346 = vmatmul.mubr.msk.f32.vlgmr.msra.gmra.mxu1 %vm290_vm9, %v2339_v11  ;;  %v447_v21 = vpop.f32.mrf.mxu1 }
 0x15f   : > { %v1961_v9 = vsel %vm2789_vm14, %v1957_v12, 0.0  ;;  %2350 = vmatmul.mubr.msk.f32.vlgmr.msra.gmra.mxu0 %vm290_vm9, %v2347_v3  ;;  %2037 = vmatprep.mubr.f32.mxu1 %v2519_v0 }
 0x160   : > { %2352 = vmatprep.subr.msk.mxu1 %vm294_vm7, %v1961_v9 }
 0x161   : > { %v1950_v7 = vpop.permute.xlu1 %1949 }
 0x162   : > { %v1956_v8 = vsel %vm1955_vm3, %v1950_v7, %v1952_v39 }
 0x163   : > { %v1960_v16 = vsel %vm2783_vm13, %v1956_v8, 0.0 }
 0x164   : > { %2353 = vmatpush1.msk.msra.mxu1 %vm294_vm7, %v1960_v16 }
 0x165   : > { %2354 = vmatmul.mubr.msk.f32.vlgmr.msra.gmra.mxu1 %vm290_vm9, %v2351_v14 }
 0x169   : > { %v2954_v30 = vpop.permute.xlu0 %650 }
 0x1f8   : > { %v365_v5 = vpop.f32.mrf.mxu0 }
 0x1f9   : > { %v446_v0 = vadd.f32 %v445_v18, %v365_v5 }
 0x1fa   : > { %v367_v17 = vpop.f32.mrf.mxu0 }
 0x1fb   : > { %v448_v23 = vadd.f32 %v447_v21, %v367_v17 }
 0x1fd   : > { %v545_v19 = vpop.f32.mrf.mxu0 }
 0x1fe   : > { %v550_v27 = vadd.f32 %v545_v19, %v446_v0 }
 0x1ff   : > { %v547_v20 = vpop.f32.mrf.mxu0 }
 0x200   : > { %v551_v28 = vadd.f32 %v547_v20, %v448_v23 }
 0x201   : > { %v833_v22 = vpop.f32.mrf.mxu0 }
 0x203   : > { %v835_v24 = vpop.f32.mrf.mxu0 }
 0x205   : > { %v1012_v4 = vpop.f32.mrf.mxu0 }
 0x207   : > { %v1014_v36 = vpop.f32.mrf.mxu0 }
 0x209   : > { %v641_v29 = vpop.f32.mrf.mxu1 }
 0x20a   : > { %v646_v33 = vadd.f32 %v641_v29, %v550_v27 }
 0x20b   : > { %v643_v34 = vpop.f32.mrf.mxu1 }
 0x20c   : > { %v647_v38 = vadd.f32 %v643_v34, %v551_v28  ;;  %v653_v40 = vadd.f32 %v2954_v30, %v646_v33  ;;  %v1301_v47 = vpop.f32.mrf.mxu0 }
 0x20d   : > { %v919_v42 = vpop.f32.mrf.mxu1 }
 0x20e   : > { %v654_v46 = vadd.f32 %v2954_v30, %v647_v38  ;;  %v920_v35 = vadd.f32 %v919_v42, %v833_v22  ;;  %v1303_v56 = vpop.f32.mrf.mxu0 }
 0x20f   : > { %v921_v41 = vpop.f32.mrf.mxu1 }
 0x210   : > { %v657_v48 = vcombine.low %v653_v40, %v654_v46  ;;  %v658_v50 = vcombine.high %v653_v40, %v654_v46  ;;  %v922_v52 = vadd.f32 %v921_v41, %v835_v24  ;;  %v1017_v53 = vadd.f32 %v1012_v4, %v920_v35 }
 0x212   : > { %v665_v54 = vrot.slane %v657_v48, %v2959_v44  ;;  %v672_v49 = vrot.slane %v658_v50, %v2959_v44  ;;  %v1018_v43 = vadd.f32 %v1014_v36, %v922_v52  ;;  %v1114_v15 = vpop.f32.mrf.mxu1 }
 0x213   : > { %v1119_v55 = vadd.f32 %v1114_v15, %v1017_v53 }
 0x214   : > { %v673_v57 = vcombine.high %v665_v54, %v665_v54  ;;  %v674_v58 = vcombine.high %v672_v49, %v672_v49  ;;  %v681_v59 = vrot.slane %v665_v54, %v2959_v44  ;;  %v688_v60 = vrot.slane %v672_v49, %v2959_v44  ;;  %v1116_v37 = vpop.f32.mrf.mxu1 }
 0x215   : > { %v1121_v45 = vadd.f32 %v1119_v55, %v2954_v30  ;;  %v1120_v51 = vadd.f32 %v1116_v37, %v1018_v43 }
 0x216   : > { %v695_v61 = vrot.slane %v673_v57, %v2959_v44  ;;  %v702_v62 = vrot.slane %v674_v58, %v2959_v44  ;;  %v703_v2 = vcombine.high %v681_v59, %v681_v59  ;;  %v704_v63 = vcombine.high %v688_v60, %v688_v60  ;;  %719 = vst.msk [vmem:[%s2976_s23] ss:$2 sm:$0x3] %vm2967_vm4, %v681_v59  ;;  %v1381_v1 = vpop.f32.mrf.mxu1  ;;  %v1481_v10 = vpop.f32.mrf.mxu0 }
 0x217   : > { %2287 = vst.msk [vmem:[%s2976_s23 + $0x20] ss:$2 sm:$0x3] %vm2967_vm4, %v688_v60  ;;  %v1122_v6 = vadd.f32 %v1120_v51, %v2954_v30  ;;  %v1382_v39 = vadd.f32 %v1381_v1, %v1301_v47 }
 0x218   : > { %v705_v11 = vcombine.high %v695_v61, %v695_v61  ;;  %v706_v12 = vcombine.high %v702_v62, %v702_v62  ;;  %2284 = vst.msk [vmem:[%s2976_s23 + $0x8] ss:$2 sm:$0x3] %vm2967_vm4, %v695_v61  ;;  %2285 = vst.msk [vmem:[%s2976_s23 + $0x10] ss:$2 sm:$0x3] %vm2967_vm4, %v703_v2  ;;  %v1383_v3 = vpop.f32.mrf.mxu1  ;;  %v1483_v14 = vpop.f32.mrf.mxu0 }
 0x219   : > { %2288 = vst.msk [vmem:[%s2976_s23 + $0x28] ss:$2 sm:$0x3] %vm2967_vm4, %v702_v62  ;;  %2289 = vst.msk [vmem:[%s2976_s23 + $0x30] ss:$2 sm:$0x3] %vm2967_vm4, %v704_v63  ;;  %v1125_v9 = vcombine.low %v1121_v45, %v1122_v6  ;;  %v1126_v7 = vcombine.high %v1121_v45, %v1122_v6  ;;  %v1384_v8 = vadd.f32 %v1383_v3, %v1303_v56 }
 0x21a   : > { %2286 = vst.msk [vmem:[%s2976_s23 + $0x18] ss:$2 sm:$0x3] %vm2967_vm4, %v705_v11  ;;  %2290 = vst.msk [vmem:[%s2976_s23 + $0x38] ss:$2 sm:$0x3] %vm2967_vm4, %v706_v12  ;;  %v1486_v16 = vadd.f32 %v1481_v10, %v1382_v39  ;;  %v1577_v19 = vpop.f32.mrf.mxu1 }
 0x21b   : > { %v1133_v5 = vrot.slane %v1125_v9, %v2959_v44  ;;  %v1140_v17 = vrot.slane %v1126_v7, %v2959_v44  ;;  %v1487_v18 = vadd.f32 %v1483_v14, %v1384_v8  ;;  %v1758_v20 = vpop.f32.mrf.mxu0 }
 0x21c   : > { %v1582_v24 = vadd.f32 %v1577_v19, %v1486_v16  ;;  %v1579_v25 = vpop.f32.mrf.mxu1 }
 0x21d   : > { %v1141_v21 = vcombine.high %v1133_v5, %v1133_v5  ;;  %v1142_v0 = vcombine.high %v1140_v17, %v1140_v17  ;;  %v1149_v22 = vrot.slane %v1133_v5, %v2959_v44  ;;  %v1156_v23 = vrot.slane %v1140_v17, %v2959_v44  ;;  %v1760_v26 = vpop.f32.mrf.mxu0 }
 0x21e   : > { %v1584_v31 = vadd.f32 %v1582_v24, %v2954_v30  ;;  %v1583_v32 = vadd.f32 %v1579_v25, %v1487_v18  ;;  %v1844_v33 = vpop.f32.mrf.mxu1 }
 0x21f   : > { %v1163_v27 = vrot.slane %v1141_v21, %v2959_v44  ;;  %v1170_v4 = vrot.slane %v1142_v0, %v2959_v44  ;;  %v1171_v28 = vcombine.high %v1149_v22, %v1149_v22  ;;  %v1172_v29 = vcombine.high %v1156_v23, %v1156_v23  ;;  %2307 = vst.msk [vmem:[%s2976_s23 + $0x1] ss:$2 sm:$0x3] %vm2967_vm4, %v1149_v22  ;;  %v1937_v40 = vpop.f32.mrf.mxu0 }
 0x220   : > { %2311 = vst.msk [vmem:[%s2976_s23 + $0x21] ss:$2 sm:$0x3] %vm2967_vm4, %v1156_v23  ;;  %v1845_v38 = vadd.f32 %v1844_v33, %v1758_v20  ;;  %v1585_v42 = vadd.f32 %v1583_v32, %v2954_v30  ;;  %v1846_v46 = vpop.f32.mrf.mxu1 }
 0x221   : > { %v1173_v34 = vcombine.high %v1163_v27, %v1163_v27  ;;  %v1174_v36 = vcombine.high %v1170_v4, %v1170_v4  ;;  %2308 = vst.msk [vmem:[%s2976_s23 + $0x9] ss:$2 sm:$0x3] %vm2967_vm4, %v1163_v27  ;;  %2309 = vst.msk [vmem:[%s2976_s23 + $0x11] ss:$2 sm:$0x3] %vm2967_vm4, %v1171_v28  ;;  %v1847_v35 = vadd.f32 %v1846_v46, %v1760_v26  ;;  %v1939_v48 = vpop.f32.mrf.mxu0 }
 0x222   : > { %2312 = vst.msk [vmem:[%s2976_s23 + $0x29] ss:$2 sm:$0x3] %vm2967_vm4, %v1170_v4  ;;  %2313 = vst.msk [vmem:[%s2976_s23 + $0x31] ss:$2 sm:$0x3] %vm2967_vm4, %v1172_v29  ;;  %v1588_v41 = vcombine.low %v1584_v31, %v1585_v42  ;;  %v1589_v47 = vcombine.high %v1584_v31, %v1585_v42  ;;  %v1942_v50 = vadd.f32 %v1937_v40, %v1845_v38 }
 0x223   : > { %2310 = vst.msk [vmem:[%s2976_s23 + $0x19] ss:$2 sm:$0x3] %vm2967_vm4, %v1173_v34  ;;  %2314 = vst.msk [vmem:[%s2976_s23 + $0x39] ss:$2 sm:$0x3] %vm2967_vm4, %v1174_v36  ;;  %v1943_v49 = vadd.f32 %v1939_v48, %v1847_v35 }
 0x224   : > { %v1596_v53 = vrot.slane %v1588_v41, %v2959_v44  ;;  %v1603_v54 = vrot.slane %v1589_v47, %v2959_v44 }
 0x225   : > { %v2039_v52 = vpop.f32.mrf.mxu1 }
 0x226   : > { %v2044_v43 = vadd.f32 %v2039_v52, %v1942_v50  ;;  %v1604_v55 = vcombine.high %v1596_v53, %v1596_v53  ;;  %v1605_v56 = vcombine.high %v1603_v54, %v1603_v54  ;;  %v1612_v57 = vrot.slane %v1596_v53, %v2959_v44 }
 0x227   : > { %v2041_v15 = vpop.f32.mrf.mxu1  ;;  %v1619_v58 = vrot.slane %v1603_v54, %v2959_v44 }
 0x228   : > { %v2045_v59 = vadd.f32 %v2041_v15, %v1943_v49  ;;  %v1626_v60 = vrot.slane %v1604_v55, %v2959_v44  ;;  %v1633_v37 = vrot.slane %v1605_v56, %v2959_v44  ;;  %v1634_v45 = vcombine.high %v1612_v57, %v1612_v57  ;;  %2331 = vst.msk [vmem:[%s2976_s23 + $0x4] ss:$2 sm:$0x3] %vm2967_vm4, %v1612_v57 }
 0x229   : > { %v1635_v51 = vcombine.high %v1619_v58, %v1619_v58  ;;  %2335 = vst.msk [vmem:[%s2976_s23 + $0x24] ss:$2 sm:$0x3] %vm2967_vm4, %v1619_v58  ;;  %v2046_v61 = vadd.f32 %v2044_v43, %v2954_v30 }
 0x22a   : > { %v2047_v62 = vadd.f32 %v2045_v59, %v2954_v30  ;;  %v1636_v2 = vcombine.high %v1626_v60, %v1626_v60  ;;  %v1637_v63 = vcombine.high %v1633_v37, %v1633_v37  ;;  %2332 = vst.msk [vmem:[%s2976_s23 + $0xc] ss:$2 sm:$0x3] %vm2967_vm4, %v1626_v60  ;;  %2333 = vst.msk [vmem:[%s2976_s23 + $0x14] ss:$2 sm:$0x3] %vm2967_vm4, %v1634_v45 }
 0x22b   : > { %2336 = vst.msk [vmem:[%s2976_s23 + $0x2c] ss:$2 sm:$0x3] %vm2967_vm4, %v1633_v37  ;;  %2337 = vst.msk [vmem:[%s2976_s23 + $0x34] ss:$2 sm:$0x3] %vm2967_vm4, %v1635_v51 }
 0x22c   : > { %v2050_v1 = vcombine.low %v2046_v61, %v2047_v62  ;;  %v2051_v6 = vcombine.high %v2046_v61, %v2047_v62  ;;  %2334 = vst.msk [vmem:[%s2976_s23 + $0x1c] ss:$2 sm:$0x3] %vm2967_vm4, %v1636_v2  ;;  %2338 = vst.msk [vmem:[%s2976_s23 + $0x3c] ss:$2 sm:$0x3] %vm2967_vm4, %v1637_v63 }
 0x22e   : > { %v2058_v30 = vrot.slane %v2050_v1, %v2959_v44  ;;  %v2065_v39 = vrot.slane %v2051_v6, %v2959_v44 }
 0x230   : > { %v2066_v10 = vcombine.high %v2058_v30, %v2058_v30  ;;  %v2067_v11 = vcombine.high %v2065_v39, %v2065_v39  ;;  %v2074_v12 = vrot.slane %v2058_v30, %v2959_v44  ;;  %v2081_v3 = vrot.slane %v2065_v39, %v2959_v44 }
 0x232   : > { %v2088_v9 = vrot.slane %v2066_v10, %v2959_v44  ;;  %v2095_v7 = vrot.slane %v2067_v11, %v2959_v44  ;;  %v2096_v8 = vcombine.high %v2074_v12, %v2074_v12  ;;  %v2097_v14 = vcombine.high %v2081_v3, %v2081_v3  ;;  %2355 = vst.msk [vmem:[%s2976_s23 + $0x5] ss:$2 sm:$0x3] %vm2967_vm4, %v2074_v12 }
 0x233   : > { %2359 = vst.msk [vmem:[%s2976_s23 + $0x25] ss:$2 sm:$0x3] %vm2967_vm4, %v2081_v3 }
 0x234   : > { %v2098_v16 = vcombine.high %v2088_v9, %v2088_v9  ;;  %v2099_v44 = vcombine.high %v2095_v7, %v2095_v7  ;;  %2356 = vst.msk [vmem:[%s2976_s23 + $0xd] ss:$2 sm:$0x3] %vm2967_vm4, %v2088_v9  ;;  %2357 = vst.msk [vmem:[%s2976_s23 + $0x15] ss:$2 sm:$0x3] %vm2967_vm4, %v2096_v8 }
 0x235   : > { %2360 = vst.msk [vmem:[%s2976_s23 + $0x2d] ss:$2 sm:$0x3] %vm2967_vm4, %v2095_v7  ;;  %2361 = vst.msk [vmem:[%s2976_s23 + $0x35] ss:$2 sm:$0x3] %vm2967_vm4, %v2097_v14 }
 0x236   : > { %2358 = vst.msk [vmem:[%s2976_s23 + $0x1d] ss:$2 sm:$0x3] %vm2967_vm4, %v2098_v16  ;;  %2362 = vst.msk [vmem:[%s2976_s23 + $0x3d] ss:$2 sm:$0x3] %vm2967_vm4, %v2099_v44 }
 0x237   : > { %2454 = shalt.err (!%p2451_p5)
}
 0x238   : > { %s2455_s8 = scalar_lea.hbm %s3084_s15, 1024  ;;  %s2459_s11 = scalar_lea.hbm %s3156_s3, 2048 }
 0x239   : > { %p2456_p6 = scmp.ne.s32.totalorder %s3084_s15, %s2455_s8  ;;  %p2460_p10 = scmp.lt.s32.totalorder %s3084_s15, %s3156_s3 }
 0x23a   : > { %p2461_p11 = scmp.lt.s32.totalorder %s2459_s11, %s2455_s8 }
 0x23b   : > { %p2457_p7 = pnand %p2456_p6, %p2594_p4 }
 0x23c   : > { %p2462_p12 = por %p2461_p11, %p2460_p10 }
 0x23d   : > { %p2458_p9 = pneg %p2457_p7 }
 0x23f   : > { %p2463_p13 = pnand %p2462_p12, %p2458_p9 }
 0x241   : > { %2466 = shalt.err (!%p2463_p13)
}
 0x242   : > { %s2532_s21 = smov 64   ;;  %s2533_s23 = smov 4  }
 0x243   : > { %2370 = dma.vmem_to_hbm [thread:$0]  (%p2594_p4), %s3086_s27, 1024, %s3084_s15, %s3108_s30, %s2532_s21, %s2532_s21, %s2533_s23  }
 0x244 PF: > { %p2376_p0 = scmp.ge.s32.totalorder %s2517_s17, 2  ;;  %s2156_s26 = sand.u32 1, %s2497_s12  }
 0x245   : > { %s2157_s28 = scalar_lea.sflag [#allocation4], %s2156_s26 }
 0x246   : > { %p2373_p1 = pnand %p2376_p0, %p2601_p8 }
 0x248   : > { %p2374_p2 = pneg %p2373_p1 }
 0x24a   : > { %2492 = dma.done.wait (%p2374_p2), %s2157_s28, 1024  }
 0x24b   : > { %2494 = vsyncadd (%p2374_p2), %s2157_s28, 4294966272  ;;  %s16_s17 = sadd.s32 1, %s2517_s17   ;;  %s3169_s12 = smov %s2501_s13 }
 0x24c   : > { %p13_p3 = scmp.ge.s32.totalorder %s16_s17, 4   ;;  %s3170_s13 = smov %s2505_s14 }
 0x24d   : > { %s3171_s14 = smov %s2607_s25  ;;  %s3172_s15 = smov %s2513_s16 }
 0x24e   : > { %s3173_s16 = smov %s3175_s20  ;;  %15 = sbr.rel (!%p13_p3) target bundleno = 4 (0x4), region = 123 }
 0x253   :  { %2162 = vsyncpa [#allocation4], 1 }
 0x254   :  { %2164 = vsyncpa [#allocation4 + $0x1], 1 }

</bundles_post_ra>
